<compile_context>
chip_gen: v7x
topology: tpu7x:2x2x1
jax: 0.10.0
libtpu: 0.0.40
codegen_flags: <defaults>
</compile_context>

<pallas_src>
import numpy as np
import jax
import jax.numpy as jnp
from jax import lax
from jax.experimental import pallas as pl
from jax.experimental.pallas import tpu as pltpu

_EPS = 1e-12           # matches torch pdist eps
_SIGMA_FLOOR = 1e-30   # keeps 1/(2*sigma*sigma_avg) finite for empty/degenerate classes


def _round_up(x, m):
    return ((x + m - 1) // m) * m


def _make_mmd_kernel(sigma):
    sigma = float(sigma)

    def kernel(x_ref, m_ref, out_ref):
        x = x_ref[...]                                     # (T, F) f32, zero-padded rows/cols
        masks = m_ref[...]                                 # (8, T) f32: row0=target, row1=student

        # Squared row norms from f32 x (precision decoupled from the bf16 Gram).
        xsq = x * x
        sq_col = jnp.sum(xsq, axis=1, keepdims=True)                        # (T, 1)
        ones_f = jnp.ones((1, x.shape[1]), jnp.float32)
        sq_row = lax.dot_general(ones_f, xsq, (((1,), (1,)), ((), ())),
                                 preferred_element_type=jnp.float32)        # (1, T)

        # Single Gram matmul on the MXU, bf16 inputs + f32 accumulate (shared by both passes).
        xb = x.astype(jnp.bfloat16)
        g = lax.dot_general(xb, xb, (((1,), (1,)), ((), ())),
                            preferred_element_type=jnp.float32)             # (T, T)
        d = jnp.maximum(sq_col + sq_row - 2.0 * g, _EPS)                    # (T, T), resident

        mt = masks[0:1, :]                                 # (1, T) target-row mask (selected class)
        ms = masks[1:2, :]                                 # (1, T) student-row mask (selected class)
        cnt_t = jnp.sum(mt)
        cnt_s = jnp.sum(ms)

        # Pass 1: masked squared-distance sums as bilinear forms; stacked (8, T) LHS so the
        # MXU does one push group.  No exp here.
        rd = lax.dot_general(masks, d, (((1,), (0,)), ((), ())),
                             preferred_element_type=jnp.float32)            # (8, T)
        sum_d_ts = jnp.sum(rd[0:1, :] * ms)                # sum over (target, student) block
        sum_d_ss = jnp.sum(rd[1:2, :] * ms)                # sum over (student, student) block

        # sigma_avg == res.mean() of the torch pdist that first computes it: the
        # (target, student) block when the target subset is non-empty, else (S, S).
        sigma_avg = jnp.where(
            cnt_t > 0.0,
            sum_d_ts / jnp.maximum(cnt_t * cnt_s, 1.0),
            sum_d_ss / jnp.maximum(cnt_s * cnt_s, 1.0))
        scale = 1.0 / (2.0 * sigma * jnp.maximum(sigma_avg, _SIGMA_FLOOR))

        # Pass 2: ONE TxT RBF kernel (EUP exp) + one stacked masked matvec group.
        # TODO(synk): for rows too large for full TxT residency (esp. v7x 64 MiB VMEM),
        # tile passes 1/2 over row blocks of D/K with f32 scalar accumulators, and mark the
        # row-block grid axis "parallel" so v7x's 2nd TensorCore shares the exp/MXU work.
        k = jnp.exp(-d * scale)                                              # (T, T)
        rk = lax.dot_general(masks, k, (((1,), (0,)), ((), ())),
                             preferred_element_type=jnp.float32)             # (8, T)
        sum_k_tt = jnp.sum(rk[0:1, :] * mt)
        sum_k_ts = jnp.sum(rk[0:1, :] * ms)
        sum_k_ss = jnp.sum(rk[1:2, :] * ms)

        k_ssg = jnp.where(cnt_t > 0.0, sum_k_ts / jnp.maximum(cnt_t * cnt_s, 1.0), 0.0)
        k_sgsg = sum_k_ss / jnp.maximum(cnt_s * cnt_s, 1.0)
        k_ss = jnp.where(cnt_t > 0.0, sum_k_tt / jnp.maximum(cnt_t * cnt_t, 1.0), 0.0)
        cand = jnp.maximum(k_ss + k_sgsg - 2.0 * k_ssg, 0.0)
        # torch skips classes with no students; if no class has students the loss is 0.
        out_ref[0, 0] = jnp.where(cnt_s > 0.0, cand, 0.0)

    return kernel


def mmd_loss(f_s, f_s_all, labels, f_s_all_labels, *, lamb, sigma, num_classes,
             num_groups=None, kernel='rbf'):
    del num_groups  # unused by the reference forward
    # TODO(synk): 'poly' kernel branch (F.normalize + (e1 @ e2.T)^2) not implemented; rbf only.
    assert kernel == 'rbf'

    n_s = f_s.shape[0]
    student = f_s.reshape(n_s, -1).astype(jnp.float32)
    target = f_s_all.astype(jnp.float32)
    n_t, feat = target.shape
    assert student.shape[1] == feat
    labels = labels.astype(jnp.int32)
    f_s_all_labels = f_s_all_labels.astype(jnp.int32)

    rows = n_t + n_s
    # Rows only need sublane (8) padding: the lane dim of G/D/K is padded to 128 inside
    # Mosaic anyway, and 8-padding minimizes exp / MXU / VMEM work for small batches.
    # Features (the lane/contraction dim of X) are padded to 128.
    rows_pad = _round_up(rows, 8)
    feat_pad = _round_up(feat, 128)

    x = jnp.zeros((rows_pad, feat_pad), jnp.float32)
    x = x.at[:n_t, :feat].set(target)
    x = x.at[n_t:rows, :feat].set(student)

    # The torch reference OVERWRITES mmd_loss each class (it does not accumulate) and skips
    # classes with no students, so only the LAST class with students determines the output.
    # Select that class here; the kernel then runs a single TxT exp instead of num_classes.
    # (If accumulation was intended upstream, this selection and the kernel must change.)
    c_ids = jnp.arange(num_classes, dtype=jnp.int32)
    has_s = jnp.any(labels[None, :] == c_ids[:, None], axis=1)
    c_last = jnp.max(jnp.where(has_s, c_ids, -1))          # -1 if no class has students
    c_sel = jnp.maximum(c_last, 0)
    valid = c_last >= 0

    mt_sel = jnp.where(valid, (f_s_all_labels == c_sel).astype(jnp.float32), 0.0)   # (n_t,)
    ms_sel = jnp.where(valid, (labels == c_sel).astype(jnp.float32), 0.0)           # (n_s,)
    # Stack into one sublane-padded (8, rows_pad) mask slab: one MXU push group per pass.
    masks = jnp.zeros((8, rows_pad), jnp.float32)
    masks = masks.at[0, :n_t].set(mt_sel)
    masks = masks.at[1, n_t:rows].set(ms_sel)

    # Scoped-VMEM budget: x (f32 + in-kernel bf16 copy) + ~4 live TxT f32 buffers + masks.
    est = (6 * rows_pad * feat_pad
           + 4 * 4 * rows_pad * rows_pad
           + 3 * 4 * 8 * rows_pad
           + (4 << 20))
    vmem_limit = int(min(max(est, 32 << 20), 100 << 20))

    cost = pl.CostEstimate(
        flops=int(2 * rows_pad * rows_pad * feat_pad          # Gram
                  + 4 * 8 * rows_pad * rows_pad               # mask @ D and mask @ K
                  + 2 * rows_pad * feat_pad),                 # ones matvec for row norms
        transcendentals=int(rows_pad * rows_pad),             # single TxT exp
        bytes_accessed=int(x.size * 4 + masks.size * 4 + 4))

    vmem = pl.BlockSpec(memory_space=pltpu.MemorySpace.VMEM)
    smem = pl.BlockSpec(memory_space=pltpu.MemorySpace.SMEM)
    mmd = pl.pallas_call(
        _make_mmd_kernel(sigma),
        out_shape=jax.ShapeDtypeStruct((1, 1), jnp.float32),
        in_specs=[vmem, vmem],
        out_specs=smem,
        compiler_params=pltpu.CompilerParams(vmem_limit_bytes=vmem_limit),
        cost_estimate=cost,
    )(x, masks)
    return 0.5 * lamb * mmd[0, 0]


# ---------------------- pure numpy reference (mirrors torch) ----------------------
def _np_pdist(e1, e2, eps=1e-12, sigma_base=1.0, sigma_avg=None):
    if len(e1) == 0 or len(e2) == 0:
        return np.zeros(1), sigma_avg
    e1s = (e1 ** 2).sum(1)
    e2s = (e2 ** 2).sum(1)
    prod = e1 @ e2.T
    res = np.clip(e1s[:, None] + e2s[None, :] - 2.0 * prod, eps, None)
    if sigma_avg is None:
        sigma_avg = res.mean()
    res = np.exp(-res / (2.0 * sigma_base * sigma_avg))
    return res, sigma_avg


def ref_mmd_loss(f_s, f_s_all, labels, f_s_all_labels, *, lamb, sigma, num_classes):
    student = f_s.reshape(f_s.shape[0], -1).astype(np.float64)
    f_s_all = f_s_all.astype(np.float64)
    mmd = 0.0
    for c in range(num_classes):
        tj = f_s_all[f_s_all_labels == c]
        sc = student[labels == c]
        if len(sc) == 0:
            continue
        K_SSg, sig = _np_pdist(tj, sc, sigma_base=sigma)
        K_SgSg, _ = _np_pdist(sc, sc, sigma_base=sigma, sigma_avg=sig)
        K_SS, _ = _np_pdist(tj, tj, sigma_base=sigma, sigma_avg=sig)
        mmd = np.clip(K_SS.mean() + K_SgSg.mean() - 2.0 * K_SSg.mean(), 0.0, np.inf)
    return 0.5 * lamb * mmd


if __name__ == "__main__":
    key = jax.random.PRNGKey(0)
    k1, k2 = jax.random.split(key)
    N, C, H, W = 8, 4, 8, 8            # student conv feature, NCHW
    M = 16                             # pool of teacher/joint features (already flat)
    num_classes, num_groups = 3, 2
    lamb, sigma = 1.0, 1.0

    f_s = jax.random.normal(k1, (N, C, H, W), jnp.float32)
    f_s_all = jax.random.normal(k2, (M, C * H * W), jnp.float32) + 1.0
    labels = jnp.array([0, 1, 2, 0, 1, 2, 0, 1], dtype=jnp.int32)
    f_s_all_labels = jnp.array([0, 1, 2] * 5 + [0], dtype=jnp.int32)

    loss = mmd_loss(f_s, f_s_all, labels, f_s_all_labels,
                    lamb=lamb, sigma=sigma, num_classes=num_classes,
                    num_groups=num_groups, kernel='rbf')
    loss = jax.block_until_ready(loss)

    ref = ref_mmd_loss(np.asarray(f_s), np.asarray(f_s_all),
                       np.asarray(labels), np.asarray(f_s_all_labels),
                       lamb=lamb, sigma=sigma, num_classes=num_classes)
    np.testing.assert_allclose(float(loss), float(ref), rtol=2e-2, atol=1e-3)
    print("KERNEL_OK")
</pallas_src>

<mosaic_0001>
module attributes {stable_mosaic.version = 11 : i64} {
  func.func @kernel(%arg0: memref<24x256xf32, #tpu.memory_space<vmem>>, %arg1: memref<8x24xf32, #tpu.memory_space<vmem>>, %arg2: memref<1x1xf32, #tpu.memory_space<smem>>) attributes {dimension_semantics = [], scalar_prefetch = 0 : i64, scratch_operands = 0 : i64, tpu.core_type = #tpu.core_type<tc>} {
    %c0 = arith.constant 0 : index
    %c0_0 = arith.constant 0 : index
    %0 = vector.load %arg0[%c0, %c0_0] : memref<24x256xf32, #tpu.memory_space<vmem>>, vector<24x256xf32>
    %c0_1 = arith.constant 0 : index
    %c0_2 = arith.constant 0 : index
    %1 = vector.load %arg1[%c0_1, %c0_2] : memref<8x24xf32, #tpu.memory_space<vmem>>, vector<8x24xf32>
    %2 = arith.mulf %0, %0 : vector<24x256xf32>
    %cst = arith.constant dense<0.000000e+00> : vector<24xf32>
    %3 = vector.multi_reduction <add>, %2, %cst [1] : vector<24x256xf32> to vector<24xf32>
    %4 = vector.shape_cast %3 : vector<24xf32> to vector<24x1xf32>
    %cst_3 = arith.constant 1.000000e+00 : f32
    %5 = vector.broadcast %cst_3 : f32 to vector<1x256xf32>
    %cst_4 = arith.constant dense<0.000000e+00> : vector<1x24xf32>
    %6 = tpu.matmul %5, %2, %cst_4 {dimension_numbers = #tpu.dot_dimension_numbers<[1], [1], [0], [0], [0, 0, 1, 0], [], []>} : vector<1x256xf32>, vector<24x256xf32>, vector<1x24xf32> -> vector<1x24xf32>
    %7 = arith.truncf %0 : vector<24x256xf32> to vector<24x256xbf16>
    %cst_5 = arith.constant dense<0.000000e+00> : vector<24x24xf32>
    %8 = tpu.matmul %7, %7, %cst_5 {dimension_numbers = #tpu.dot_dimension_numbers<[1], [1], [0], [0], [0, 0, 1, 0], [], []>} : vector<24x256xbf16>, vector<24x256xbf16>, vector<24x24xf32> -> vector<24x24xf32>
    %9 = vector.broadcast %4 : vector<24x1xf32> to vector<24x24xf32>
    %10 = vector.broadcast %6 : vector<1x24xf32> to vector<24x24xf32>
    %11 = arith.addf %9, %10 : vector<24x24xf32>
    %cst_6 = arith.constant 2.000000e+00 : f32
    %12 = vector.broadcast %cst_6 : f32 to vector<24x24xf32>
    %13 = arith.mulf %12, %8 : vector<24x24xf32>
    %14 = arith.subf %11, %13 : vector<24x24xf32>
    %cst_7 = arith.constant 9.99999996E-13 : f32
    %15 = vector.broadcast %cst_7 : f32 to vector<24x24xf32>
    %16 = arith.maximumf %14, %15 : vector<24x24xf32>
    %17 = vector.extract_strided_slice %1 {offsets = [0, 0], sizes = [1, 24], strides = [1, 1]} : vector<8x24xf32> to vector<1x24xf32>
    %18 = vector.extract_strided_slice %1 {offsets = [1, 0], sizes = [1, 24], strides = [1, 1]} : vector<8x24xf32> to vector<1x24xf32>
    %19 = vector.shape_cast %17 : vector<1x24xf32> to vector<1x1x24xf32>
    %cst_8 = arith.constant dense<0.000000e+00> : vector<1xf32>
    %20 = vector.multi_reduction <add>, %19, %cst_8 [1, 2] : vector<1x1x24xf32> to vector<1xf32>
    %21 = vector.shape_cast %20 : vector<1xf32> to vector<1x1x1xf32>
    %22 = vector.extract %21[0, 0, 0] : f32 from vector<1x1x1xf32>
    %23 = vector.shape_cast %18 : vector<1x24xf32> to vector<1x1x24xf32>
    %cst_9 = arith.constant dense<0.000000e+00> : vector<1xf32>
    %24 = vector.multi_reduction <add>, %23, %cst_9 [1, 2] : vector<1x1x24xf32> to vector<1xf32>
    %25 = vector.shape_cast %24 : vector<1xf32> to vector<1x1x1xf32>
    %26 = vector.extract %25[0, 0, 0] : f32 from vector<1x1x1xf32>
    %cst_10 = arith.constant dense<0.000000e+00> : vector<8x24xf32>
    %27 = tpu.matmul %1, %16, %cst_10 {dimension_numbers = #tpu.dot_dimension_numbers<[1], [0], [0], [1], [0, 0, 1, 1], [], []>} : vector<8x24xf32>, vector<24x24xf32>, vector<8x24xf32> -> vector<8x24xf32>
    %28 = vector.extract_strided_slice %27 {offsets = [0, 0], sizes = [1, 24], strides = [1, 1]} : vector<8x24xf32> to vector<1x24xf32>
    %29 = arith.mulf %28, %18 : vector<1x24xf32>
    %30 = vector.shape_cast %29 : vector<1x24xf32> to vector<1x1x24xf32>
    %cst_11 = arith.constant dense<0.000000e+00> : vector<1xf32>
    %31 = vector.multi_reduction <add>, %30, %cst_11 [1, 2] : vector<1x1x24xf32> to vector<1xf32>
    %32 = vector.shape_cast %31 : vector<1xf32> to vector<1x1x1xf32>
    %33 = vector.extract %32[0, 0, 0] : f32 from vector<1x1x1xf32>
    %34 = vector.extract_strided_slice %27 {offsets = [1, 0], sizes = [1, 24], strides = [1, 1]} : vector<8x24xf32> to vector<1x24xf32>
    %35 = arith.mulf %34, %18 : vector<1x24xf32>
    %36 = vector.shape_cast %35 : vector<1x24xf32> to vector<1x1x24xf32>
    %cst_12 = arith.constant dense<0.000000e+00> : vector<1xf32>
    %37 = vector.multi_reduction <add>, %36, %cst_12 [1, 2] : vector<1x1x24xf32> to vector<1xf32>
    %38 = vector.shape_cast %37 : vector<1xf32> to vector<1x1x1xf32>
    %39 = vector.extract %38[0, 0, 0] : f32 from vector<1x1x1xf32>
    %cst_13 = arith.constant 0.000000e+00 : f32
    %40 = arith.cmpf ogt, %22, %cst_13 : f32
    %41 = arith.mulf %22, %26 : f32
    %cst_14 = arith.constant 1.000000e+00 : f32
    %42 = arith.maximumf %41, %cst_14 : f32
    %43 = arith.divf %33, %42 : f32
    %44 = arith.mulf %26, %26 : f32
    %cst_15 = arith.constant 1.000000e+00 : f32
    %45 = arith.maximumf %44, %cst_15 : f32
    %46 = arith.divf %39, %45 : f32
    %47 = arith.select %40, %43, %46 : f32
    %cst_16 = arith.constant 1.000000e-30 : f32
    %48 = arith.maximumf %47, %cst_16 : f32
    %cst_17 = arith.constant 2.000000e+00 : f32
    %49 = arith.mulf %cst_17, %48 : f32
    %cst_18 = arith.constant 1.000000e+00 : f32
    %50 = arith.divf %cst_18, %49 : f32
    %cst_19 = arith.constant 0.000000e+00 : f32
    %51 = vector.broadcast %cst_19 : f32 to vector<24x24xf32>
    %52 = arith.subf %51, %16 : vector<24x24xf32>
    %53 = vector.broadcast %50 : f32 to vector<24x24xf32>
    %54 = arith.mulf %52, %53 : vector<24x24xf32>
    %55 = math.exp %54 : vector<24x24xf32>
    %cst_20 = arith.constant dense<0.000000e+00> : vector<8x24xf32>
    %56 = tpu.matmul %1, %55, %cst_20 {dimension_numbers = #tpu.dot_dimension_numbers<[1], [0], [0], [1], [0, 0, 1, 1], [], []>} : vector<8x24xf32>, vector<24x24xf32>, vector<8x24xf32> -> vector<8x24xf32>
    %57 = vector.extract_strided_slice %56 {offsets = [0, 0], sizes = [1, 24], strides = [1, 1]} : vector<8x24xf32> to vector<1x24xf32>
    %58 = arith.mulf %57, %17 : vector<1x24xf32>
    %59 = vector.shape_cast %58 : vector<1x24xf32> to vector<1x1x24xf32>
    %cst_21 = arith.constant dense<0.000000e+00> : vector<1xf32>
    %60 = vector.multi_reduction <add>, %59, %cst_21 [1, 2] : vector<1x1x24xf32> to vector<1xf32>
    %61 = vector.shape_cast %60 : vector<1xf32> to vector<1x1x1xf32>
    %62 = vector.extract %61[0, 0, 0] : f32 from vector<1x1x1xf32>
    %63 = vector.extract_strided_slice %56 {offsets = [0, 0], sizes = [1, 24], strides = [1, 1]} : vector<8x24xf32> to vector<1x24xf32>
    %64 = arith.mulf %63, %18 : vector<1x24xf32>
    %65 = vector.shape_cast %64 : vector<1x24xf32> to vector<1x1x24xf32>
    %cst_22 = arith.constant dense<0.000000e+00> : vector<1xf32>
    %66 = vector.multi_reduction <add>, %65, %cst_22 [1, 2] : vector<1x1x24xf32> to vector<1xf32>
    %67 = vector.shape_cast %66 : vector<1xf32> to vector<1x1x1xf32>
    %68 = vector.extract %67[0, 0, 0] : f32 from vector<1x1x1xf32>
    %69 = vector.extract_strided_slice %56 {offsets = [1, 0], sizes = [1, 24], strides = [1, 1]} : vector<8x24xf32> to vector<1x24xf32>
    %70 = arith.mulf %69, %18 : vector<1x24xf32>
    %71 = vector.shape_cast %70 : vector<1x24xf32> to vector<1x1x24xf32>
    %cst_23 = arith.constant dense<0.000000e+00> : vector<1xf32>
    %72 = vector.multi_reduction <add>, %71, %cst_23 [1, 2] : vector<1x1x24xf32> to vector<1xf32>
    %73 = vector.shape_cast %72 : vector<1xf32> to vector<1x1x1xf32>
    %74 = vector.extract %73[0, 0, 0] : f32 from vector<1x1x1xf32>
    %cst_24 = arith.constant 0.000000e+00 : f32
    %75 = arith.cmpf ogt, %22, %cst_24 : f32
    %76 = arith.mulf %22, %26 : f32
    %cst_25 = arith.constant 1.000000e+00 : f32
    %77 = arith.maximumf %76, %cst_25 : f32
    %78 = arith.divf %68, %77 : f32
    %cst_26 = arith.constant 0.000000e+00 : f32
    %79 = arith.select %75, %78, %cst_26 : f32
    %80 = arith.mulf %26, %26 : f32
    %cst_27 = arith.constant 1.000000e+00 : f32
    %81 = arith.maximumf %80, %cst_27 : f32
    %82 = arith.divf %74, %81 : f32
    %cst_28 = arith.constant 0.000000e+00 : f32
    %83 = arith.cmpf ogt, %22, %cst_28 : f32
    %84 = arith.mulf %22, %22 : f32
    %cst_29 = arith.constant 1.000000e+00 : f32
    %85 = arith.maximumf %84, %cst_29 : f32
    %86 = arith.divf %62, %85 : f32
    %cst_30 = arith.constant 0.000000e+00 : f32
    %87 = arith.select %83, %86, %cst_30 : f32
    %88 = arith.addf %87, %82 : f32
    %cst_31 = arith.constant 2.000000e+00 : f32
    %89 = arith.mulf %cst_31, %79 : f32
    %90 = arith.subf %88, %89 : f32
    %cst_32 = arith.constant 0.000000e+00 : f32
    %91 = arith.maximumf %90, %cst_32 : f32
    %cst_33 = arith.constant 0.000000e+00 : f32
    %92 = arith.cmpf ogt, %26, %cst_33 : f32
    %cst_34 = arith.constant 0.000000e+00 : f32
    %93 = arith.select %92, %91, %cst_34 : f32
    %c0_35 = arith.constant 0 : index
    %c0_36 = arith.constant 0 : index
    %94 = memref.load %arg2[%c0_35, %c0_36] : memref<1x1xf32, #tpu.memory_space<smem>>
    memref.store %93, %arg2[%c0_35, %c0_36] : memref<1x1xf32, #tpu.memory_space<smem>>
    return
  }
}

</mosaic_0001>

<bundles_post_ra>
// kernel: tpu_custom_call.1
= control target key start
LH: loop header
LB: loop body
LE: loop exit
PB: predicated region body
PF: predicated region fallthrough
CT: control target
= control target key end

     0   :  { %7 = vsyncpa [#allocation3], 0  ;;  %s775_s0 = inlined_call_operand.hbm [shape: f32[24,256], index: 0, kind: input, shape index: {}]   ;;  %s776_s1 = inlined_call_operand.hbm [shape: f32[8,24], index: 1, kind: input, shape index: {}]   ;;  %s777_s2 = inlined_call_operand.hbm [shape: f32[1,1], index: 2, kind: output, shape index: {}]  }
   0x1   :  { %8 = vsyncpa [#allocation6], 0 }
   0x2   :  { %9 = vsyncpa [#allocation4], 0  ;;  %s643_s9 = smov [#allocation2]   ;;  %s583_s13 = scalar_lea.hbm %s775_s0, 768 }
   0x3   :  { %s15_s10 = sshll.u32 %s643_s9, 4  ;;  %p584_p0 = scmp.ne.s32.totalorder %s775_s0, %s583_s13  ;;  %s16_s10 = int_to_ptr.vmem [resolvable:$true] %s15_s10 }
   0x4   :  { %p587_p1 = scmp.lt.u32.totalorder %s583_s13, %s775_s0 }
   0x6   :  { %p589_p2 = pnand %p587_p1, %p584_p0 }
   0x8   :  { %592 = shalt.err (!%p589_p2)
}
   0x9   :  { %s593_s18 = scalar_lea.vmem %s16_s10, 768  ;;  %p598_p4 = scmp.lt.s32.totalorder %s16_s10, %s16_s10 }
   0xa   :  { %p594_p3 = scmp.ne.s32.totalorder %s16_s10, %s593_s18  ;;  %p599_p5 = scmp.lt.s32.totalorder %s593_s18, %s593_s18 }
   0xc   :  { %p600_p6 = por %p599_p5, %p598_p4 }
   0xe   :  { %p601_p7 = pnand %p600_p6, %p594_p3 }
  0x10   :  { %604 = shalt.err (!%p601_p7)
}
  0x11   :  { %s644_s19 = smov 256   ;;  %s645_s20 = smov 16  }
  0x12   :  { %21 = dma.hbm_to_vmem [thread:$0]  %s775_s0, 768, %s16_s10, [#allocation3], %s644_s19, %s644_s19, %s645_s20  }
  0x13   :  { %s646_s23 = smov [#allocation5]   ;;  %s605_s27 = scalar_lea.hbm %s776_s1, 128 }
  0x14   :  { %s28_s24 = sshll.u32 %s646_s23, 4  ;;  %p606_p8 = scmp.ne.s32.totalorder %s776_s1, %s605_s27  ;;  %s29_s24 = int_to_ptr.vmem [resolvable:$true] %s28_s24 }
  0x15   :  { %p609_p9 = scmp.lt.u32.totalorder %s605_s27, %s776_s1 }
  0x17   :  { %p611_p10 = pnand %p609_p9, %p606_p8 }
  0x19   :  { %614 = shalt.err (!%p611_p10)
}
  0x1a   :  { %s615_s4 = scalar_lea.vmem %s29_s24, 128  ;;  %p620_p12 = scmp.lt.s32.totalorder %s29_s24, %s29_s24 }
  0x1b   :  { %p616_p11 = scmp.ne.s32.totalorder %s29_s24, %s615_s4  ;;  %p621_p13 = scmp.lt.s32.totalorder %s615_s4, %s615_s4 }
  0x1d   :  { %p622_p0 = por %p621_p13, %p620_p12 }
  0x1f   :  { %p623_p1 = pnand %p622_p0, %p616_p11 }
  0x21   :  { %626 = shalt.err (!%p623_p1)
}
  0x22   :  { %31 = dma.hbm_to_vmem [thread:$0]  %s776_s1, 128, %s29_s24, [#allocation6]  }
  0x23   :  { %637 = dma.done.wait [#allocation3], 768  }
  0x24   :  { %638 = vsyncadd [#allocation3], 4294966528 }
  0x25   :  { %639 = dma.done.wait [#allocation6], 128  }
  0x26   :  { %640 = vsyncadd [#allocation6], 4294967168  ;;  %v647_v0 = vmov 1.0   ;;  %v40_v1 = vld [vmem:[#allocation2 + $0x8] sm:$0xff]  ;;  %v42_v2 = vld [vmem:[#allocation2 + $0x18] sm:$0xff]  ;;  %v648_v22 = vmov 0.0|0.0   ;;  %v183_v28 = vlaneseq }
  0x27   :  { %125 = vmatprep.mubr.f32.mxu0 %v647_v0  ;;  %v39_v3 = vld [vmem:[#allocation2] sm:$0xff]  ;;  %v132_v4 = vpack.c.bf16 %v42_v2, %v40_v1  ;;  %v41_v5 = vld [vmem:[#allocation2 + $0x10] sm:$0xff]  ;;  %v47_v6 = vmul.f32 %v40_v1, %v40_v1  ;;  %v49_v7 = vmul.f32 %v42_v2, %v42_v2  ;;  %v44_v9 = vld [vmem:[#allocation2 + $0x28] sm:$0xff]  ;;  %vm649_vm0 = vmmov 0   ;;  %s651_s7 = smov 1.0   ;;  %s653_s5 = smov 0.0  }
  0x28   :  { %v46_v8 = vmul.f32 %v39_v3, %v39_v3  ;;  %v131_v10 = vpack.c.bf16 %v41_v5, %v39_v3  ;;  %v48_v11 = vmul.f32 %v41_v5, %v41_v5  ;;  %v134_v12 = vpack.c.bf16 %v44_v9, %v44_v9  ;;  %v43_v13 = vld [vmem:[#allocation2 + $0x20] sm:$0xff]  ;;  %v696_v24 = vld [vmem:[#allocation5] sm:$0xff]  ;;  %s652_s20 = smov 1e-30  }
  0x29   :  { %135 = vmatprep.subr.bf16.mxu1 %v132_v4  ;;  %v525_v14 = vpack.c.bf16 %v49_v7, %v47_v6  ;;  %v51_v15 = vmul.f32 %v44_v9, %v44_v9  ;;  %v50_v16 = vmul.f32 %v43_v13, %v43_v13  ;;  %167 = vmatprep.mubr.bf16.mxu1 %v132_v4  ;;  %v650_v23 = vmov 0.0  }
  0x2a   :  { %136 = vmatpush1.bf16.xpose.msra.mxu1 %v131_v10  ;;  %v527_v17 = vpack.c.bf16 %v48_v11, %v46_v8  ;;  %v52_v18 = vadd.f32 %v47_v6, %v46_v8  ;;  %v55_v20 = vadd.f32 %v49_v7, %v48_v11  ;;  %v133_v21 = vpack.c.bf16 %v43_v13, %v43_v13 }
  0x2b   :  { %526 = vmatprep.subr.bf16.mxu0 %v525_v14  ;;  %137 = vmatprep.subr.bf16.mxu1 %v134_v12  ;;  %v58_v19 = vadd.f32 %v51_v15, %v50_v16  ;;  %vm199_vm1 = vcmask 188416   ;;  %v699_v25 = vrot.slane %v696_v24, 1  ;;  %v184_v29 = vshrl.u32 %v183_v28, 7 }
  0x2c   :  { %528 = vmatpush1.bf16.xpose.msra.mxu0 %v527_v17  ;;  %53 = vadd.xlane.f32.xlu0 %v52_v18  ;;  %v200_v26 = vsel %vm199_vm1, %v696_v24, 0.0  ;;  %vm223_vm2 = vcmask 195584  }
  0x2d   :  { %65 = vmatprep.subr.mxu0 %v51_v15  ;;  %59 = vadd.xlane.f32.xlu1 %v58_v19  ;;  %v213_v27 = vsel %vm199_vm1, %v699_v25, 0.0  ;;  %v185_v31 = vsub.s32 0, %v184_v29 }
  0x30   :  { %56 = vadd.xlane.f32.xlu0 %v55_v20 }
  0x31   :  { %201 = vadd.xlane.f32.xlu1 %v200_v26 }
  0x32   :  { %138 = vmatpush1.bf16.xpose.msra.mxu1 %v133_v21 }
  0x34   :  { %66 = vmatpush1.xpose.msra.mxu0 %v50_v16  ;;  %214 = vadd.xlane.f32.xlu0 %v213_v27 }
  0x35   :  { %529 = vmatprep.subr.bf16.mxu0 %v648_v22 }
  0x37   :  { %126 = vmatmul.mubr.f32.vlgmr.msra.gmra.mrb[0].mxu0 %v647_v0 }
  0x38   :  { %513 = vmatprep.mubr.msk.f32.mxu0 %vm649_vm0, %v650_v23 }
  0x39   :  { %168 = vmatmul.mubr.bf16.vlgmr.msra.gmra.mrb[0].mxu1 %v131_v10 }
  0x3a   :  { %175 = vmatprep.mubr.bf16.mxu1 %v134_v12 }
  0x41   :  { %176 = vmatmul.mubr.bf16.gmra.mrb[4].mxu1 %v133_v21 }
  0xb9   :  { %v54_v30 = vpop.xlane.xlu0 %53 }
  0xba   :  { %v60_v46 = vpop.xlane.xlu1 %59 }
  0xbd   :  { %v57_v33 = vpop.xlane.xlu0 %56 }
  0xbe   :  { %v202_v58 = vpop.xlane.xlu1 %201 }
  0xbf   :  { %v203_v60 = vrot.slane %v202_v58, 4 }
  0xc1   :  { %v215_v59 = vpop.xlane.xlu0 %214  ;;  %v204_v62 = vadd.f32 %v203_v60, %v202_v58 }
  0xc2   :  { %v216_v61 = vrot.slane %v215_v59, 4 }
  0xc3   :  { %v205_v0 = vrot.slane %v204_v62, 2 }
  0xc4   :  { %v217_v63 = vadd.f32 %v216_v61, %v215_v59 }
  0xc5   :  { %v206_v2 = vadd.f32 %v205_v0, %v204_v62 }
  0xc6   :  { %v218_v1 = vrot.slane %v217_v63, 2 }
  0xc7   :  { %v207_v4 = vrot.slane %v206_v2, 1 }
  0xc8   :  { %v219_v3 = vadd.f32 %v218_v1, %v217_v63 }
  0xc9   :  { %v208_v6 = vadd.f32 %v207_v4, %v206_v2 }
  0xca   :  { %v220_v5 = vrot.slane %v219_v3, 1 }
  0xcb   :  { %535 = vpush %v208_v6 }
  0xcc   :  { %v221_v7 = vadd.f32 %v220_v5, %v219_v3 }
  0xce   :  { %537 = vpush %v221_v7 }
  0xfc   :  { %s719_s1 = spop %535 }
  0xfd   :  { %s467_s6 = smul.f32 %s719_s1, %s719_s1  ;;  %p321_p2 = scmp.gt.f32.partialorder %s719_s1, 0.0 }
  0xff   :  { %s723_s8 = smax.f32 %s651_s7, %s467_s6  ;;  %s729_s9 = spop %537 }
 0x100   :  { %s322_s10 = smul.f32 %s729_s9, %s719_s1  ;;  %v469_v0 = vstv %s723_s8  ;;  %p478_p3 = scmp.gt.f32.partialorder %s729_s9, 0.0 }
 0x101   :  { %s328_s11 = smul.f32 %s729_s9, %s729_s9 }
 0x102   :  { %s323_s12 = smax.f32 %s651_s7, %s322_s10  ;;  %s627_s10 = scalar_lea.hbm %s777_s2, 16 }
 0x103   :  { %s329_s13 = smax.f32 %s651_s7, %s328_s11  ;;  %v324_v17 = vstv %s323_s12  ;;  %p628_p4 = scmp.ne.s32.totalorder %s777_s2, %s627_s10 }
 0x104   :  { %v330_v19 = vstv %s329_s13  ;;  %569 = vrcp.f32 %v324_v17  ;;  %p631_p5 = scmp.lt.u32.totalorder %s627_s10, %s777_s2 }
 0x105   :  { %571 = vrcp.f32 %v330_v19 }
 0x106   :  { %p633_p6 = pnand %p631_p5, %p628_p4 }
 0x10a   :  { %v127_v32 = vpop.f32.mrb[0].mxu0 }
 0x10b   :  { %v186_v34 = vrot.slane %v127_v32, %v185_v31  ;;  %v129_v35 = vpop.f32.mrb[1].mxu0 }
 0x10c   :  { %v169_v36 = vpop.f32.mrb[0].mxu1 }
 0x10d   :  { %v187_v37 = vadd.f32 %v186_v34, %v54_v30  ;;  %v190_v38 = vmul.f32 2.0, %v169_v36  ;;  %v171_v39 = vpop.f32.mrb[1].mxu1  ;;  %v188_v40 = vadd.f32 %v186_v34, %v57_v33  ;;  %v189_v50 = vadd.f32 %v186_v34, %v60_v46 }
 0x10e   :  { %v172_v41 = vpop.f32.mrb[2].mxu1  ;;  %v570_v34 = vpop.eup %569 }
 0x10f   :  { %v193_v42 = vsub.f32 %v187_v37, %v190_v38  ;;  %v191_v43 = vmul.f32 2.0, %v172_v41  ;;  %v174_v44 = vpop.f32.mrb[3].mxu1  ;;  %v572_v35 = vpop.eup %571 }
 0x111   :  { %v194_v45 = vsub.f32 %v188_v40, %v191_v43  ;;  %v705_v47 = vmax.f32 %v193_v42, 1e-12 }
 0x113   :  { %v707_v48 = vmax.f32 %v194_v45, 1e-12  ;;  %v340_v38 = vsub.f32 0.0, %v705_v47 }
 0x114   :  { %v177_v49 = vpop.f32.mrb[4].mxu1 }
 0x115   :  { %v530_v51 = vpack.c.bf16 %v707_v48, %v705_v47  ;;  %v192_v52 = vmul.f32 2.0, %v177_v49  ;;  %v179_v53 = vpop.f32.mrb[5].mxu1  ;;  %v341_v39 = vsub.f32 0.0, %v707_v48 }
 0x116   :  { %v180_v54 = vpop.f32.mrb[6].mxu1 }
 0x117   :  { %v195_v55 = vsub.f32 %v189_v50, %v192_v52  ;;  %v181_v56 = vpop.f32.mrb[7].mxu1  ;;  %531 = vmatpush3.bf16.msra.mxu0 %v530_v51 }
 0x118   :  { %511 = vmatprep.subr.mxu0 %v650_v23 }
 0x119   :  { %v712_v57 = vmax.f32 %v195_v55, 1e-12 }
 0x11b   :  { %512 = vmatpush3.msra.mxu0 %v712_v57  ;;  %v342_v43 = vsub.f32 0.0, %v712_v57 }
 0x11c   :  { %514 = vmatmul.mubr.msk.f32.vlgmr.msra.gmra.mrb[2].mxu0 %vm223_vm2, %v696_v24  ;;  %532 = vmatprep.subr.bf16.mxu0 %v648_v22 }
 0x11d   :  { %522 = vmatprep.mubr.msk.f32.mxu0 %vm649_vm0, %v650_v23 }
 0x1ef   :  { %v292_v8 = vpop.f32.mrb[2].mxu0 }
 0x1f0   :  { %v296_v9 = vmul.f32 %v292_v8, %v699_v25  ;;  %v307_v10 = vmul.f32 %v292_v8, %v696_v24  ;;  %v515_v11 = vpop.f32.mrb[3].mxu0 }
 0x1f2   :  { %v309_v12 = vrot.slane %v307_v10, 1  ;;  %v297_v13 = vsel %vm199_vm1, %v296_v9, 0.0 }
 0x1f3   :  { %298 = vadd.xlane.f32.xlu1 %v297_v13 }
 0x1f4   :  { %v311_v14 = vsel %vm199_vm1, %v309_v12, 0.0 }
 0x1f5   :  { %312 = vadd.xlane.f32.xlu0 %v311_v14 }
 0x280   :  { %v299_v15 = vpop.xlane.xlu1 %298 }
 0x281   :  { %v300_v16 = vrot.slane %v299_v15, 4 }
 0x282   :  { %v313_v18 = vpop.xlane.xlu0 %312 }
 0x283   :  { %v301_v20 = vadd.f32 %v300_v16, %v299_v15  ;;  %v314_v21 = vrot.slane %v313_v18, 4 }
 0x285   :  { %v302_v22 = vrot.slane %v301_v20, 2  ;;  %v315_v26 = vadd.f32 %v314_v21, %v313_v18 }
 0x287   :  { %v316_v27 = vrot.slane %v315_v26, 2  ;;  %v303_v28 = vadd.f32 %v302_v22, %v301_v20 }
 0x289   :  { %v304_v29 = vrot.slane %v303_v28, 1  ;;  %v317_v30 = vadd.f32 %v316_v27, %v315_v26 }
 0x28b   :  { %v305_v31 = vadd.f32 %v304_v29, %v303_v28  ;;  %v318_v32 = vrot.slane %v317_v30, 1 }
 0x28d   :  { %539 = vpush %v305_v31  ;;  %v319_v33 = vadd.f32 %v318_v32, %v317_v30 }
 0x28f   :  { %541 = vpush %v319_v33 }
 0x290   :  { %543 = vpush %v570_v34 }
 0x291   :  { %545 = vpush %v572_v35 }
 0x2be   :  { %s540_s14 = spop %539 }
 0x2c0   :  { %s542_s15 = spop %541 }
 0x2c1   :  { %s735_s16 = spop %543 }
 0x2c2   :  { %s327_s17 = smul.f32 %s735_s16, %s540_s14  ;;  %s738_s18 = spop %545 }
 0x2c3   :  { %s333_s19 = smul.f32 %s738_s18, %s542_s15 }
 0x2c5   :  { %s779_s17 = smov (!%p321_p2, %s327_s17), %s333_s19 }
 0x2c6   :  { %s335_s21 = smax.f32 %s652_s20, %s779_s17 }
 0x2c7   :  { %s336_s22 = smul.f32 2.0, %s335_s21 }
 0x2c9   :  { %v337_v36 = vstv %s336_s22 }
 0x2ca   :  { %573 = vrcp.f32 %v337_v36 }
 0x2d4   :  { %v574_v37 = vpop.eup %573 }
 0x2d5   :  { %547 = vpush %v574_v37 }
 0x306   :  { %s548_s23 = spop %547 }
 0x307   :  { %v343_v40 = vstv %s548_s23 }
 0x308   :  { %v344_v41 = vmul.f32 %v343_v40, %v340_v38  ;;  %v345_v42 = vmul.f32 %v343_v40, %v341_v39  ;;  %v346_v46 = vmul.f32 %v343_v40, %v342_v43 }
 0x30a   :  { %v347_v44 = vmul.f32 1.442695, %v344_v41  ;;  %v349_v45 = vmul.f32 1.442695, %v345_v42  ;;  %v351_v49 = vmul.f32 1.442695, %v346_v46 }
 0x30c   :  { %575 = vpow2.f32 %v347_v44 }
 0x30d   :  { %577 = vpow2.f32 %v349_v45 }
 0x30e   :  { %579 = vpow2.f32 %v351_v49 }
 0x30f   :  { %581 = vrcp.f32 %v469_v0 }
 0x316   :  { %v576_v50 = vpop.eup %575 }
 0x317   :  { %v578_v51 = vpop.eup %577 }
 0x318   :  { %v533_v52 = vpack.c.bf16 %v578_v51, %v576_v50  ;;  %v580_v47 = vpop.eup %579 }
 0x319   :  { %v582_v15 = vpop.eup %581 }
 0x31a   :  { %534 = vmatpush3.bf16.msra.mxu0 %v533_v52 }
 0x31b   :  { %520 = vmatprep.subr.mxu0 %v650_v23 }
 0x31e   :  { %521 = vmatpush3.msra.mxu0 %v580_v47 }
 0x31f   :  { %523 = vmatmul.mubr.msk.f32.vlgmr.msra.gmra.mrb[4].mxu0 %vm223_vm2, %v696_v24 }
 0x3f2   :  { %v419_v48 = vpop.f32.mrb[4].mxu0 }
 0x3f3   :  { %v423_v53 = vmul.f32 %v419_v48, %v696_v24  ;;  %v434_v54 = vmul.f32 %v419_v48, %v699_v25  ;;  %v524_v55 = vpop.f32.mrb[5].mxu0 }
 0x3f5   :  { %v435_v56 = vsel %vm199_vm1, %v434_v54, 0.0  ;;  %v424_v57 = vsel %vm199_vm1, %v423_v53, 0.0  ;;  %v446_v58 = vrot.slane %v423_v53, 1 }
 0x3f6   :  { %436 = vadd.xlane.f32.xlu0 %v435_v56  ;;  %425 = vadd.xlane.f32.xlu1 %v424_v57 }
 0x3f7   :  { %v448_v23 = vsel %vm199_vm1, %v446_v58, 0.0 }
 0x3fa   :  { %449 = vadd.xlane.f32.xlu1 %v448_v23 }
 0x483   :  { %v437_v59 = vpop.xlane.xlu0 %436  ;;  %v426_v60 = vpop.xlane.xlu1 %425 }
 0x484   :  { %v438_v61 = vrot.slane %v437_v59, 4  ;;  %v427_v62 = vrot.slane %v426_v60, 4 }
 0x486   :  { %v439_v63 = vadd.f32 %v438_v61, %v437_v59  ;;  %v428_v24 = vadd.f32 %v427_v62, %v426_v60 }
 0x487   :  { %v450_v1 = vpop.xlane.xlu1 %449 }
 0x488   :  { %v440_v25 = vrot.slane %v439_v63, 2  ;;  %v429_v2 = vrot.slane %v428_v24, 2  ;;  %v451_v3 = vrot.slane %v450_v1, 4 }
 0x48a   :  { %v441_v4 = vadd.f32 %v440_v25, %v439_v63  ;;  %v452_v5 = vadd.f32 %v451_v3, %v450_v1  ;;  %v430_v6 = vadd.f32 %v429_v2, %v428_v24 }
 0x48c   :  { %v453_v7 = vrot.slane %v452_v5, 2  ;;  %v431_v8 = vrot.slane %v430_v6, 1  ;;  %v442_v9 = vrot.slane %v441_v4, 1 }
 0x48e   :  { %v454_v10 = vadd.f32 %v453_v7, %v452_v5  ;;  %v432_v11 = vadd.f32 %v431_v8, %v430_v6  ;;  %v443_v12 = vadd.f32 %v442_v9, %v441_v4 }
 0x490   :  { %549 = vpush %v432_v11  ;;  %v455_v13 = vrot.slane %v454_v10, 1 }
 0x491   :  { %551 = vpush %v443_v12 }
 0x492   :  { %v456_v14 = vadd.f32 %v455_v13, %v454_v10 }
 0x494   :  { %553 = vpush %v456_v14 }
 0x495   :  { %555 = vpush %v582_v15 }
 0x4c1   :  { %s550_s24 = spop %549 }
 0x4c2   :  { %s552_s25 = spop %551 }
 0x4c3   :  { %s461_s26 = smul.f32 %s552_s25, %s735_s16 }
 0x4c5   :  { %s554_s27 = spop %553  ;;  %s781_s26 = smov (!%p321_p2, %s461_s26), 0.0 }
 0x4c6   :  { %s556_s28 = spop %555  ;;  %s466_s30 = smul.f32 %s554_s27, %s738_s18 }
 0x4c7   :  { %s472_s29 = smul.f32 %s556_s28, %s550_s24 }
 0x4c8   :  { %s475_s3 = smul.f32 2.0, %s781_s26 }
 0x4c9   :  { %s783_s29 = smov (!%p321_p2, %s472_s29), 0.0 }
 0x4ca   :  { %s474_s4 = sadd.f32 %s783_s29, %s466_s30 }
 0x4cc   :  { %s476_s0 = ssub.f32 %s474_s4, %s475_s3 }
 0x4ce   :  { %s477_s6 = smax.f32 %s653_s5, %s476_s0 }
 0x4cf   :  { %s785_s6 = smov (!%p478_p3, %s477_s6), 0.0 }
 0x4d0   :  { %481 = sst [smem:[#allocation7]] %s785_s6 }
 0x4d1   :  { %636 = shalt.err (!%p633_p6)
}
 0x4d2   :  { %s654_s1 = smov [#allocation7]  }
 0x4d3   :  { %489 = dma.smem_to_hbm %s654_s1, 16, %s777_s2, [#allocation4]  }
 0x4d4   :  { %641 = dma.done.wait [#allocation4], 16  }
 0x4d5   :  { %642 = vsyncadd [#allocation4], 4294967280 }
 0x4d6   :  { %493 = sfence }
 0x4d7   :  { %494 = vsyncpa [#allocation3], 1 }
 0x4d8   :  { %495 = vsyncpa [#allocation6], 1 }
 0x4d9   :  { %496 = vsyncpa [#allocation4], 1 }

</bundles_post_ra>
